<compile_context>
chip_gen: v7x
topology: tpu7x:2x2x1
jax: 0.10.0
libtpu: 0.0.40
codegen_flags: <defaults>
</compile_context>

<pallas_src>
import functools

import jax
import jax.numpy as jnp
from jax.experimental import pallas as pl
from jax.experimental.pallas import tpu as pltpu


def _round_up(n, m):
    return ((n + m - 1) // m) * m


def _encoder_kernel(x_ref, w_ref, b_ref, out_ref, *, latent, d_in):
    # x_ref  : [TB, d_in] f32  (natural feature width, multiple of 8)
    # w_ref  : [4, W, W]  bf16 (0..2 = hidden layers, 3 = fused mu|log-sigma head)
    # b_ref  : [4, W]     f32
    # out_ref: [TB, W]    f32  (cols [0:latent] = mu, [latent:2*latent] = sigma)
    h = x_ref[...].astype(jnp.bfloat16)

    # Layer 0: contract only over the real input features (static sublane slice
    # of the padded weight block — zero-cost view, fewer MXU K passes).
    acc = jnp.dot(h, w_ref[0, :d_in, :], preferred_element_type=jnp.float32)
    acc = acc + b_ref[0:1, :]
    h = jnp.maximum(acc, 0.0).astype(jnp.bfloat16)

    # Layers 1..2: full 128-lane padded matmuls (padding lanes stay zero).
    for layer in (1, 2):
        acc = jnp.dot(h, w_ref[layer], preferred_element_type=jnp.float32)
        acc = acc + b_ref[layer:layer + 1, :]           # bias add in f32 (VPU)
        h = jnp.maximum(acc, 0.0).astype(jnp.bfloat16)  # relu f32, feed MXU bf16

    # Fused mu | log-sigma head.
    head = jnp.dot(h, w_ref[3], preferred_element_type=jnp.float32)
    head = head + b_ref[3:4, :]
    # mu columns pass through; log-sigma (and padding) columns get exp() (EUP).
    # Note: exp can overflow to inf for huge pre-activations, same as the
    # PyTorch reference.
    col = jax.lax.broadcasted_iota(jnp.int32, head.shape, 1)
    out_ref[...] = jnp.where(col < latent, head, jnp.exp(head)).astype(out_ref.dtype)


def init_params(key, size_input_layer, size_layer_one, size_layer_two,
                size_layer_three, size_latent_space):
    """Deterministic synthetic parameters (nn.Linear layout, stored as [in, out])."""
    ks = jax.random.split(key, 10)

    def lin(kw, kb, fan_in, fan_out):
        bound = 1.0 / jnp.sqrt(jnp.float32(fan_in))
        w = jax.random.uniform(kw, (fan_in, fan_out), jnp.float32, -bound, bound)
        b = jax.random.uniform(kb, (1, fan_out), jnp.float32, -bound, bound)
        return w, b

    w1, b1 = lin(ks[0], ks[1], size_input_layer, size_layer_one)
    w2, b2 = lin(ks[2], ks[3], size_layer_one, size_layer_two)
    w3, b3 = lin(ks[4], ks[5], size_layer_two, size_layer_three)
    w_mu, b_mu = lin(ks[6], ks[7], size_layer_three, size_latent_space)
    w_sig, b_sig = lin(ks[8], ks[9], size_layer_three, size_latent_space)
    return {"w1": w1, "b1": b1, "w2": w2, "b2": b2, "w3": w3, "b3": b3,
            "w_mu": w_mu, "b_mu": b_mu, "w_sig": w_sig, "b_sig": b_sig}


def prepare_params(params):
    """Fuse the two latent heads, zero-pad every layer width to a common multiple
    of 128 lanes, stack weights/biases into single operands, cast weights bf16."""
    d_in, d1 = params["w1"].shape
    d2 = params["w2"].shape[1]
    d3 = params["w3"].shape[1]
    latent = params["w_mu"].shape[1]
    width = _round_up(max(d_in, d1, d2, d3, 2 * latent), 128)
    d_in_p = _round_up(d_in, 8)   # sublane-aligned contraction length for layer 0

    w_head = jnp.concatenate([params["w_mu"], params["w_sig"]], axis=1)
    b_head = jnp.concatenate([params["b_mu"], params["b_sig"]], axis=1)

    def pad_w(w):
        return jnp.zeros((width, width), jnp.float32).at[:w.shape[0], :w.shape[1]].set(w)

    def pad_b(b):
        b = b.reshape(-1)
        return jnp.zeros((width,), jnp.float32).at[:b.shape[0]].set(b)

    w_stack = jnp.stack([pad_w(params["w1"]), pad_w(params["w2"]),
                         pad_w(params["w3"]), pad_w(w_head)]).astype(jnp.bfloat16)
    b_stack = jnp.stack([pad_b(params["b1"]), pad_b(params["b2"]),
                         pad_b(params["b3"]), pad_b(b_head)])
    return {"w_stack": w_stack, "b_stack": b_stack,
            "latent": latent, "width": width, "d_in": d_in, "d_in_p": d_in_p}


def variational_encoder_forward(x, prepared, *, block_batch=512):
    """Whole encoder forward in one pallas_call. Returns (mu, sigma)."""
    w_stack, b_stack = prepared["w_stack"], prepared["b_stack"]
    latent = prepared["latent"]
    width = prepared["width"]
    d_in = prepared["d_in"]
    d_in_p = prepared["d_in_p"]

    B = x.shape[0]
    # Batch tile: multiple of 8 (f32 sublane); capped so large batches stream
    # through a 'parallel' grid axis (megacore on v7x, pipelined DMA elsewhere).
    tb = min(block_batch, _round_up(B, 8))
    b_pad = _round_up(B, tb)

    if b_pad == B and d_in_p == d_in:
        x_p = x.astype(jnp.float32)                      # no HBM copy needed
    else:
        x_p = jnp.zeros((b_pad, d_in_p), jnp.float32).at[:B, :d_in].set(
            x.astype(jnp.float32))

    flops = 2 * b_pad * (d_in_p * width + 3 * width * width)
    bytes_accessed = (x_p.size * 4 + w_stack.size * 2 + b_stack.size * 4
                      + b_pad * width * 4)

    out = pl.pallas_call(
        functools.partial(_encoder_kernel, latent=latent, d_in=d_in_p),
        out_shape=jax.ShapeDtypeStruct((b_pad, width), jnp.float32),
        grid_spec=pltpu.PrefetchScalarGridSpec(
            num_scalar_prefetch=0,
            grid=(b_pad // tb,),
            in_specs=[
                pl.BlockSpec((tb, d_in_p), lambda i: (i, 0)),          # x tile
                pl.BlockSpec((4, width, width), lambda i: (0, 0, 0)),  # weights (VMEM-resident)
                pl.BlockSpec((4, width), lambda i: (0, 0)),            # biases (VMEM-resident)
            ],
            out_specs=pl.BlockSpec((tb, width), lambda i: (i, 0)),
        ),
        compiler_params=pltpu.CompilerParams(
            dimension_semantics=("parallel",)),
        cost_estimate=pl.CostEstimate(
            flops=flops, transcendentals=b_pad * width,
            bytes_accessed=bytes_accessed),
    )(x_p, w_stack, b_stack)

    mu = out[:B, :latent]
    sigma = out[:B, latent:2 * latent]
    return mu, sigma


def reference_forward_f32(x, p):
    h = jax.nn.relu(x @ p["w1"] + p["b1"])
    h = jax.nn.relu(h @ p["w2"] + p["b2"])
    h = jax.nn.relu(h @ p["w3"] + p["b3"])
    mu = h @ p["w_mu"] + p["b_mu"]
    sigma = jnp.exp(h @ p["w_sig"] + p["b_sig"])
    return mu, sigma


def reference_forward_matched(x, p):
    """Plain-JAX reference with the same bf16-operand / f32-accumulate scheme."""
    def dot(a, w):
        return jnp.dot(a.astype(jnp.bfloat16), w.astype(jnp.bfloat16),
                       preferred_element_type=jnp.float32)
    h = jnp.maximum(dot(x, p["w1"]) + p["b1"], 0.0)
    h = jnp.maximum(dot(h, p["w2"]) + p["b2"], 0.0)
    h = jnp.maximum(dot(h, p["w3"]) + p["b3"], 0.0)
    mu = dot(h, p["w_mu"]) + p["b_mu"]
    sigma = jnp.exp(dot(h, p["w_sig"]) + p["b_sig"])
    return mu, sigma


if __name__ == "__main__":
    size_input_layer, size_layer_one, size_layer_two, size_layer_three, size_latent = (
        32, 64, 48, 32, 16)
    batch = 8

    key = jax.random.PRNGKey(0)
    k_x, k_p, k_eps = jax.random.split(key, 3)
    x = jax.random.normal(k_x, (batch, size_input_layer), jnp.float32)
    params = init_params(k_p, size_input_layer, size_layer_one, size_layer_two,
                         size_layer_three, size_latent)
    prepared = prepare_params(params)

    mu, sigma = variational_encoder_forward(x, prepared)
    mu = jax.block_until_ready(mu)
    sigma = jax.block_until_ready(sigma)

    # Tight check vs a reference using the same bf16-input / f32-accum scheme.
    mu_m, sigma_m = reference_forward_matched(x, params)
    assert jnp.allclose(mu, mu_m, atol=1e-3, rtol=1e-3)
    assert jnp.allclose(sigma, sigma_m, atol=1e-3, rtol=1e-3)

    # Loose check vs the full-f32 reference (bf16 matmul inputs -> ~1% error).
    mu_f, sigma_f = reference_forward_f32(x, params)
    assert jnp.allclose(mu, mu_f, atol=5e-2, rtol=5e-2)
    assert jnp.allclose(sigma, sigma_f, atol=5e-2, rtol=5e-2)

    # TODO(synk): torch.distributions.Normal(mu, sigma) has no Pallas/JAX-array
    # equivalent; z is represented by (mu, sigma) and a reparameterized sample
    # is drawn in plain JAX outside the kernel.
    z_sample = mu + sigma * jax.random.normal(k_eps, mu.shape, jnp.float32)
    jax.block_until_ready(z_sample)

    print("KERNEL_OK")
</pallas_src>

<mosaic_0001>
module attributes {stable_mosaic.version = 11 : i64} {
  func.func @_encoder_kernel(%arg0: i32, %arg1: memref<8x32xf32, #tpu.memory_space<vmem>>, %arg2: memref<4x128x128xbf16, #tpu.memory_space<vmem>>, %arg3: memref<4x128xf32, #tpu.memory_space<vmem>>, %arg4: memref<8x128xf32, #tpu.memory_space<vmem>>) attributes {dimension_semantics = [#tpu.dimension_semantics<parallel>], iteration_bounds = array<i64: 1>, scalar_prefetch = 0 : i64, scratch_operands = 0 : i64, tpu.core_type = #tpu.core_type<tc>, window_params = [{transform_indices = @transform_0, window_bounds = array<i64: 8, 32>}, {pipeline_mode = #tpu.pipeline_mode<synchronous>, transform_indices = @transform_1, window_bounds = array<i64: 4, 128, 128>}, {pipeline_mode = #tpu.pipeline_mode<synchronous>, transform_indices = @transform_2, window_bounds = array<i64: 4, 128>}, {transform_indices = @transform_3, window_bounds = array<i64: 8, 128>}]} {
    %c0 = arith.constant 0 : index
    %c0_0 = arith.constant 0 : index
    %0 = vector.load %arg1[%c0, %c0_0] : memref<8x32xf32, #tpu.memory_space<vmem>>, vector<8x32xf32>
    %1 = arith.truncf %0 : vector<8x32xf32> to vector<8x32xbf16>
    %c0_1 = arith.constant 0 : index
    %c0_2 = arith.constant 0 : index
    %c0_3 = arith.constant 0 : index
    %2 = vector.load %arg2[%c0_1, %c0_2, %c0_3] : memref<4x128x128xbf16, #tpu.memory_space<vmem>>, vector<1x32x128xbf16>
    %3 = vector.shape_cast %2 : vector<1x32x128xbf16> to vector<32x128xbf16>
    %cst = arith.constant dense<0.000000e+00> : vector<8x128xf32>
    %4 = tpu.matmul %1, %3, %cst {dimension_numbers = #tpu.dot_dimension_numbers<[1], [0], [0], [1], [0, 0, 1, 1], [], []>} : vector<8x32xbf16>, vector<32x128xbf16>, vector<8x128xf32> -> vector<8x128xf32>
    %c0_4 = arith.constant 0 : index
    %c0_5 = arith.constant 0 : index
    %5 = vector.load %arg3[%c0_4, %c0_5] : memref<4x128xf32, #tpu.memory_space<vmem>>, vector<1x128xf32>
    %6 = vector.broadcast %5 : vector<1x128xf32> to vector<8x128xf32>
    %7 = arith.addf %4, %6 : vector<8x128xf32>
    %cst_6 = arith.constant 0.000000e+00 : f32
    %8 = vector.broadcast %cst_6 : f32 to vector<8x128xf32>
    %9 = arith.maximumf %7, %8 : vector<8x128xf32>
    %10 = arith.truncf %9 : vector<8x128xf32> to vector<8x128xbf16>
    %c1 = arith.constant 1 : index
    %c0_7 = arith.constant 0 : index
    %c0_8 = arith.constant 0 : index
    %11 = vector.load %arg2[%c1, %c0_7, %c0_8] : memref<4x128x128xbf16, #tpu.memory_space<vmem>>, vector<1x128x128xbf16>
    %12 = vector.shape_cast %11 : vector<1x128x128xbf16> to vector<128x128xbf16>
    %cst_9 = arith.constant dense<0.000000e+00> : vector<8x128xf32>
    %13 = tpu.matmul %10, %12, %cst_9 {dimension_numbers = #tpu.dot_dimension_numbers<[1], [0], [0], [1], [0, 0, 1, 1], [], []>} : vector<8x128xbf16>, vector<128x128xbf16>, vector<8x128xf32> -> vector<8x128xf32>
    %c1_10 = arith.constant 1 : index
    %c0_11 = arith.constant 0 : index
    %14 = vector.load %arg3[%c1_10, %c0_11] : memref<4x128xf32, #tpu.memory_space<vmem>>, vector<1x128xf32>
    %15 = vector.broadcast %14 : vector<1x128xf32> to vector<8x128xf32>
    %16 = arith.addf %13, %15 : vector<8x128xf32>
    %cst_12 = arith.constant 0.000000e+00 : f32
    %17 = vector.broadcast %cst_12 : f32 to vector<8x128xf32>
    %18 = arith.maximumf %16, %17 : vector<8x128xf32>
    %19 = arith.truncf %18 : vector<8x128xf32> to vector<8x128xbf16>
    %c2 = arith.constant 2 : index
    %c0_13 = arith.constant 0 : index
    %c0_14 = arith.constant 0 : index
    %20 = vector.load %arg2[%c2, %c0_13, %c0_14] : memref<4x128x128xbf16, #tpu.memory_space<vmem>>, vector<1x128x128xbf16>
    %21 = vector.shape_cast %20 : vector<1x128x128xbf16> to vector<128x128xbf16>
    %cst_15 = arith.constant dense<0.000000e+00> : vector<8x128xf32>
    %22 = tpu.matmul %19, %21, %cst_15 {dimension_numbers = #tpu.dot_dimension_numbers<[1], [0], [0], [1], [0, 0, 1, 1], [], []>} : vector<8x128xbf16>, vector<128x128xbf16>, vector<8x128xf32> -> vector<8x128xf32>
    %c2_16 = arith.constant 2 : index
    %c0_17 = arith.constant 0 : index
    %23 = vector.load %arg3[%c2_16, %c0_17] : memref<4x128xf32, #tpu.memory_space<vmem>>, vector<1x128xf32>
    %24 = vector.broadcast %23 : vector<1x128xf32> to vector<8x128xf32>
    %25 = arith.addf %22, %24 : vector<8x128xf32>
    %cst_18 = arith.constant 0.000000e+00 : f32
    %26 = vector.broadcast %cst_18 : f32 to vector<8x128xf32>
    %27 = arith.maximumf %25, %26 : vector<8x128xf32>
    %28 = arith.truncf %27 : vector<8x128xf32> to vector<8x128xbf16>
    %c3 = arith.constant 3 : index
    %c0_19 = arith.constant 0 : index
    %c0_20 = arith.constant 0 : index
    %29 = vector.load %arg2[%c3, %c0_19, %c0_20] : memref<4x128x128xbf16, #tpu.memory_space<vmem>>, vector<1x128x128xbf16>
    %30 = vector.shape_cast %29 : vector<1x128x128xbf16> to vector<128x128xbf16>
    %cst_21 = arith.constant dense<0.000000e+00> : vector<8x128xf32>
    %31 = tpu.matmul %28, %30, %cst_21 {dimension_numbers = #tpu.dot_dimension_numbers<[1], [0], [0], [1], [0, 0, 1, 1], [], []>} : vector<8x128xbf16>, vector<128x128xbf16>, vector<8x128xf32> -> vector<8x128xf32>
    %c3_22 = arith.constant 3 : index
    %c0_23 = arith.constant 0 : index
    %32 = vector.load %arg3[%c3_22, %c0_23] : memref<4x128xf32, #tpu.memory_space<vmem>>, vector<1x128xf32>
    %33 = vector.broadcast %32 : vector<1x128xf32> to vector<8x128xf32>
    %34 = arith.addf %31, %33 : vector<8x128xf32>
    %35 = tpu.iota {dimensions = array<i32: 1>} : vector<8x128xi32>
    %c16_i32 = arith.constant 16 : i32
    %36 = vector.broadcast %c16_i32 : i32 to vector<8x128xi32>
    %37 = arith.cmpi slt, %35, %36 : vector<8x128xi32>
    %38 = math.exp %34 : vector<8x128xf32>
    %39 = arith.select %37, %34, %38 : vector<8x128xi1>, vector<8x128xf32>
    %c0_24 = arith.constant 0 : index
    %c0_25 = arith.constant 0 : index
    %40 = vector.load %arg4[%c0_24, %c0_25] : memref<8x128xf32, #tpu.memory_space<vmem>>, vector<8x128xf32>
    tpu.vector_store %arg4[%c0_24, %c0_25], %39 {strides = array<i32>} : memref<8x128xf32, #tpu.memory_space<vmem>>, vector<8x128xf32>,
    return
  }
  func.func @transform_0(%arg0: i32) -> (i32, i32) {
    %c0_i32 = arith.constant 0 : i32
    %c0_i32_0 = arith.constant 0 : i32
    return %arg0, %c0_i32 : i32, i32
  }
  func.func @transform_1(%arg0: i32) -> (i32, i32, i32) {
    %c0_i32 = arith.constant 0 : i32
    %c0_i32_0 = arith.constant 0 : i32
    %c0_i32_1 = arith.constant 0 : i32
    %c0_i32_2 = arith.constant 0 : i32
    return %c0_i32, %c0_i32_0, %c0_i32_1 : i32, i32, i32
  }
  func.func @transform_2(%arg0: i32) -> (i32, i32) {
    %c0_i32 = arith.constant 0 : i32
    %c0_i32_0 = arith.constant 0 : i32
    %c0_i32_1 = arith.constant 0 : i32
    return %c0_i32, %c0_i32_0 : i32, i32
  }
  func.func @transform_3(%arg0: i32) -> (i32, i32) {
    %c0_i32 = arith.constant 0 : i32
    %c0_i32_0 = arith.constant 0 : i32
    return %arg0, %c0_i32 : i32, i32
  }
}

</mosaic_0001>

<bundles_post_ra>
// kernel: tpu_custom_call.1
= control target key start
LH: loop header
LB: loop body
LE: loop exit
PB: predicated region body
PF: predicated region fallthrough
CT: control target
= control target key end

     0   :  { %8 = vsyncpa [#allocation3], 0  ;;  %s820_s0 = inlined_call_operand.hbm [shape: f32[8,32], index: 0, kind: input, shape index: {}]   ;;  %s821_s1 = inlined_call_operand.hbm [shape: bf16[4,128,128], index: 1, kind: input, shape index: {}]   ;;  %s822_s2 = inlined_call_operand.vmem [shape: f32[4,128], index: 2, kind: input, shape index: {}]   ;;  %s823_s3 = inlined_call_operand.hbm [shape: f32[8,128], index: 3, kind: output, shape index: {}]  }
   0x1   :  { %9 = vsyncpa [#allocation6], 0 }
   0x2   :  { %10 = vsyncpa [#allocation4], 0  ;;  %s704_s12 = smov [#allocation2]   ;;  %s705_s14 = smov [#allocation5]  }
   0x3   :  { %s17_s13 = sshll.u32 %s704_s12, 4  ;;  %s26_s15 = sshll.u32 %s705_s14, 4  ;;  %s18_s13 = int_to_ptr.vmem [resolvable:$true] %s17_s13  ;;  %s731_s15 = int_to_ptr.vmem [resolvable:$true] %s26_s15 }
   0x4   :  { %s632_s18 = scalar_lea.hbm %s820_s0, 128 }
   0x5   :  { %p633_p0 = scmp.ne.s32.totalorder %s820_s0, %s632_s18  ;;  %p636_p1 = scmp.lt.u32.totalorder %s632_s18, %s820_s0 }
   0x7   :  { %p638_p2 = pnand %p636_p1, %p633_p0 }
   0x9   :  { %641 = shalt.err (!%p638_p2)
}
   0xa   :  { %s642_s23 = scalar_lea.vmem %s18_s13, 128  ;;  %p647_p4 = scmp.lt.s32.totalorder %s18_s13, %s18_s13 }
   0xb   :  { %p643_p3 = scmp.ne.s32.totalorder %s18_s13, %s642_s23  ;;  %p648_p5 = scmp.lt.s32.totalorder %s642_s23, %s642_s23 }
   0xd   :  { %p649_p6 = por %p648_p5, %p647_p4 }
   0xf   :  { %p650_p7 = pnand %p649_p6, %p643_p3 }
  0x11   :  { %653 = shalt.err (!%p650_p7)
}
  0x12   :  { %20 = dma.hbm_to_vmem [thread:$0]  %s820_s0, 128, %s18_s13, [#allocation3]  }
  0x13   :  { %s654_s28 = scalar_lea.hbm %s821_s1, 4096 }
  0x14   :  { %p655_p8 = scmp.ne.s32.totalorder %s821_s1, %s654_s28  ;;  %p658_p9 = scmp.lt.u32.totalorder %s654_s28, %s821_s1 }
  0x16   :  { %p660_p10 = pnand %p658_p9, %p655_p8 }
  0x18   :  { %663 = shalt.err (!%p660_p10)
}
  0x19   :  { %s664_s6 = scalar_lea.vmem %s731_s15, 4096  ;;  %p669_p12 = scmp.lt.s32.totalorder %s731_s15, %s731_s15 }
  0x1a   :  { %p665_p11 = scmp.ne.s32.totalorder %s731_s15, %s664_s6  ;;  %p670_p13 = scmp.lt.s32.totalorder %s664_s6, %s664_s6 }
  0x1c   :  { %p671_p0 = por %p670_p13, %p669_p12 }
  0x1e   :  { %p672_p1 = pnand %p671_p0, %p665_p11 }
  0x20   :  { %675 = shalt.err (!%p672_p1)
}
  0x21   :  { %s706_s0 = smov 64   ;;  %s707_s7 = smov 4  }
  0x22   :  { %32 = dma.hbm_to_vmem [thread:$0]  %s821_s1, 4096, %s731_s15, [#allocation6], %s706_s0, %s706_s0, %s707_s7  }
  0x23   :  { %698 = dma.done.wait [#allocation3], 128  }
  0x24   :  { %699 = vsyncadd [#allocation3], 4294967168 }
  0x25   :  { %700 = dma.done.wait [#allocation6], 4096  }
  0x26   :  { %701 = vsyncadd [#allocation6], 4294963200  ;;  %v708_v0 = vmov 0.0   ;;  %vm709_vm0 = vmmov 0   ;;  %v604_v1 = vld [vmem:[#allocation5] sm:$0xff]   ;;  %v605_v2 = vld [vmem:[#allocation5 + $0x8] sm:$0xff]   ;;  %v445_v60 = vlaneseq }
  0x27   :  { %529 = vmatprep.subr.bf16.mxu0 %v708_v0  ;;  %533 = vmatprep.mubr.msk.bf16.mxu0 %vm709_vm0, %v708_v0  ;;  %v42_v3 = vld [vmem:[#allocation2] sm:$0xff]  ;;  %v606_v4 = vld [vmem:[#allocation5 + $0x40] sm:$0xff]   ;;  %v607_v6 = vld [vmem:[#allocation5 + $0x48] sm:$0xff]   ;;  %vm65_vm1 = vcmask 261120   ;;  %s710_s17 = smov [#allocation7]  }
  0x28   :  { %537 = vmatprep.subr.bf16.mxu1 %v708_v0  ;;  %553 = vmatprep.mubr.msk.bf16.mxu1 %vm709_vm0, %v708_v0  ;;  %v43_v5 = vpack.c.bf16 %v42_v3, %v42_v3  ;;  %v608_v7 = vld [vmem:[#allocation5 + $0x50] sm:$0xff]   ;;  %v609_v8 = vld [vmem:[#allocation5 + $0x58] sm:$0xff]   ;;  %v610_v9 = vld [vmem:[#allocation5 + $0x60] sm:$0xff]   ;;  %v446_v61 = vand.u32 127, %v445_v60  ;;  %s458_s18 = sshll.u32 %s710_s17, 4  ;;  %s459_s18 = int_to_ptr.vmem [resolvable:$true] %s458_s18 }
  0x29   :  { %530 = vmatpush3.bf16.msra.mxu0 %v604_v1  ;;  %538 = vmatpush3.bf16.msra.mxu1 %v606_v4  ;;  %v611_v10 = vld [vmem:[#allocation5 + $0x68] sm:$0xff]   ;;  %v612_v11 = vld [vmem:[#allocation5 + $0x70] sm:$0xff]   ;;  %v613_v12 = vld [vmem:[#allocation5 + $0x78] sm:$0xff]   ;;  %s676_s19 = scalar_lea.vmem %s459_s18, 128  ;;  %p681_p3 = scmp.lt.s32.totalorder %s459_s18, %s459_s18 }
  0x2a   :  { %531 = vmatprep.subr.bf16.mxu0 %v708_v0  ;;  %539 = vmatprep.subr.bf16.mxu1 %v708_v0  ;;  %v614_v13 = vld [vmem:[#allocation5 + $0x80] sm:$0xff]   ;;  %v615_v14 = vld [vmem:[#allocation5 + $0x88] sm:$0xff]   ;;  %v616_v15 = vld [vmem:[#allocation5 + $0x90] sm:$0xff]   ;;  %vm447_vm2 = vcmp.lt.s32.totalorder %v446_v61, 16  ;;  %p677_p2 = scmp.ne.s32.totalorder %s459_s18, %s676_s19  ;;  %p682_p4 = scmp.lt.s32.totalorder %s676_s19, %s676_s19 }
  0x2b   :  { %v617_v16 = vld [vmem:[#allocation5 + $0x98] sm:$0xff]   ;;  %v618_v17 = vld [vmem:[#allocation5 + $0xa0] sm:$0xff]   ;;  %v619_v18 = vld [vmem:[#allocation5 + $0xa8] sm:$0xff]  }
  0x2c   :  { %v468_v19 = vld [vmem:[%s822_s2] ss:$0 sm:$0xff]  ;;  %v620_v27 = vld [vmem:[#allocation5 + $0xb0] sm:$0xff]   ;;  %v622_v29 = vld [vmem:[#allocation5 + $0xc0] sm:$0xff]   ;;  %p683_p5 = por %p682_p4, %p681_p3 }
  0x2d   :  { %532 = vmatpush3.bf16.msra.mxu0 %v605_v2  ;;  %540 = vmatpush3.bf16.msra.mxu1 %v607_v6  ;;  %v621_v28 = vld [vmem:[#allocation5 + $0xb8] sm:$0xff]   ;;  %v623_v30 = vld [vmem:[#allocation5 + $0xc8] sm:$0xff]   ;;  %v624_v31 = vld [vmem:[#allocation5 + $0xd0] sm:$0xff]  }
  0x2e   :  { %557 = vmatprep.subr.bf16.mxu0 %v708_v0  ;;  %541 = vmatprep.subr.bf16.mxu1 %v708_v0  ;;  %v625_v32 = vld [vmem:[#allocation5 + $0xd8] sm:$0xff]   ;;  %v626_v33 = vld [vmem:[#allocation5 + $0xe0] sm:$0xff]   ;;  %v627_v34 = vld [vmem:[#allocation5 + $0xe8] sm:$0xff]   ;;  %p684_p6 = pnand %p683_p5, %p677_p2 }
  0x2f   :  { %v472_v35 = vld [vmem:[%s822_s2 + $0x1] ss:$0 sm:$0xff]  ;;  %v628_v43 = vld [vmem:[#allocation5 + $0xf0] sm:$0xff]   ;;  %v481_v45 = vld [vmem:[%s822_s2 + $0x2] ss:$0 sm:$0xff] }
  0x30   :  { %534 = vmatmul.mubr.msk.bf16.vlgmr.msra.gmra.mrb[0].mxu0 %vm65_vm1, %v43_v5  ;;  %v629_v44 = vld [vmem:[#allocation5 + $0xf8] sm:$0xff]  }
  0x31   :  { %573 = vmatprep.mubr.msk.bf16.mxu0 %vm709_vm0, %v708_v0  ;;  %542 = vmatpush3.bf16.msra.mxu1 %v608_v7  ;;  %v490_v53 = vld [vmem:[%s822_s2 + $0x3] ss:$0 sm:$0xff] }
  0x32   :  { %543 = vmatprep.subr.bf16.mxu1 %v708_v0  ;;  %558 = vmatpush3.bf16.msra.mxu0 %v614_v13 }
  0x33   :  { %559 = vmatprep.subr.bf16.mxu0 %v708_v0 }
  0x35   :  { %544 = vmatpush3.bf16.msra.mxu1 %v609_v8 }
  0x36   :  { %545 = vmatprep.subr.bf16.mxu1 %v708_v0  ;;  %560 = vmatpush3.bf16.msra.mxu0 %v615_v14 }
  0x37   :  { %561 = vmatprep.subr.bf16.mxu0 %v708_v0 }
  0x39   :  { %546 = vmatpush3.bf16.msra.mxu1 %v610_v9 }
  0x3a   :  { %547 = vmatprep.subr.bf16.mxu1 %v708_v0  ;;  %562 = vmatpush3.bf16.msra.mxu0 %v616_v15 }
  0x3b   :  { %563 = vmatprep.subr.bf16.mxu0 %v708_v0 }
  0x3d   :  { %548 = vmatpush3.bf16.msra.mxu1 %v611_v10 }
  0x3e   :  { %549 = vmatprep.subr.bf16.mxu1 %v708_v0  ;;  %564 = vmatpush3.bf16.msra.mxu0 %v617_v16 }
  0x3f   :  { %565 = vmatprep.subr.bf16.mxu0 %v708_v0 }
  0x41   :  { %550 = vmatpush3.bf16.msra.mxu1 %v612_v11 }
  0x42   :  { %551 = vmatprep.subr.bf16.mxu1 %v708_v0  ;;  %566 = vmatpush3.bf16.msra.mxu0 %v618_v17 }
  0x43   :  { %567 = vmatprep.subr.bf16.mxu0 %v708_v0 }
  0x45   :  { %552 = vmatpush3.bf16.msra.mxu1 %v613_v12 }
  0x46   :  { %577 = vmatprep.subr.bf16.mxu1 %v708_v0  ;;  %568 = vmatpush3.bf16.msra.mxu0 %v619_v18 }
  0x47   :  { %569 = vmatprep.subr.bf16.mxu0 %v708_v0 }
  0x4a   :  { %570 = vmatpush3.bf16.msra.mxu0 %v620_v27 }
  0x4b   :  { %571 = vmatprep.subr.bf16.mxu0 %v708_v0 }
  0x4e   :  { %572 = vmatpush3.bf16.msra.mxu0 %v621_v28 }
 0x103   :  { %v103_v20 = vpop.f32.mrb[0].mxu0 }
 0x104   :  { %v104_v21 = vadd.f32 %v468_v19, %v103_v20  ;;  %v535_v22 = vpop.f32.mrb[1].mxu0 }
 0x105   :  { %v106_v23 = vpop.f32.mrb[2].mxu0 }
 0x106   :  { %v109_v24 = vmax.f32 %v104_v21, 0.0  ;;  %v536_v25 = vpop.f32.mrb[3].mxu0 }
 0x108   :  { %v110_v26 = vpack.c.bf16 %v109_v24, %v109_v24 }
 0x10a   :  { %554 = vmatmul.mubr.bf16.vlgmr.msra.gmra.mrb[0].mxu1 %v110_v26 }
 0x10b   :  { %593 = vmatprep.mubr.msk.bf16.mxu1 %vm709_vm0, %v708_v0  ;;  %578 = vmatpush3.bf16.msra.mxu1 %v622_v29 }
 0x10c   :  { %579 = vmatprep.subr.bf16.mxu1 %v708_v0 }
 0x10f   :  { %580 = vmatpush3.bf16.msra.mxu1 %v623_v30 }
 0x110   :  { %581 = vmatprep.subr.bf16.mxu1 %v708_v0 }
 0x113   :  { %582 = vmatpush3.bf16.msra.mxu1 %v624_v31 }
 0x114   :  { %583 = vmatprep.subr.bf16.mxu1 %v708_v0 }
 0x117   :  { %584 = vmatpush3.bf16.msra.mxu1 %v625_v32 }
 0x118   :  { %585 = vmatprep.subr.bf16.mxu1 %v708_v0 }
 0x11b   :  { %586 = vmatpush3.bf16.msra.mxu1 %v626_v33 }
 0x11c   :  { %587 = vmatprep.subr.bf16.mxu1 %v708_v0 }
 0x11f   :  { %588 = vmatpush3.bf16.msra.mxu1 %v627_v34 }
 0x120   :  { %589 = vmatprep.subr.bf16.mxu1 %v708_v0 }
 0x123   :  { %590 = vmatpush3.bf16.msra.mxu1 %v628_v43 }
 0x124   :  { %591 = vmatprep.subr.bf16.mxu1 %v708_v0 }
 0x127   :  { %592 = vmatpush3.bf16.msra.mxu1 %v629_v44 }
 0x1dd   :  { %v215_v36 = vpop.f32.mrb[0].mxu1 }
 0x1de   :  { %v216_v37 = vadd.f32 %v472_v35, %v215_v36  ;;  %v555_v38 = vpop.f32.mrb[1].mxu1 }
 0x1df   :  { %v218_v39 = vpop.f32.mrb[2].mxu1 }
 0x1e0   :  { %v221_v40 = vmax.f32 %v216_v37, 0.0  ;;  %v556_v41 = vpop.f32.mrb[3].mxu1 }
 0x1e2   :  { %v222_v42 = vpack.c.bf16 %v221_v40, %v221_v40 }
 0x1e4   :  { %574 = vmatmul.mubr.bf16.vlgmr.msra.gmra.mrb[4].mxu0 %v222_v42 }
 0x2b7   :  { %v327_v46 = vpop.f32.mrb[4].mxu0 }
 0x2b8   :  { %v328_v47 = vadd.f32 %v481_v45, %v327_v46  ;;  %v575_v48 = vpop.f32.mrb[5].mxu0 }
 0x2b9   :  { %v330_v49 = vpop.f32.mrb[6].mxu0 }
 0x2ba   :  { %v333_v50 = vmax.f32 %v328_v47, 0.0  ;;  %v576_v51 = vpop.f32.mrb[7].mxu0 }
 0x2bc   :  { %v334_v52 = vpack.c.bf16 %v333_v50, %v333_v50 }
 0x2be   :  { %594 = vmatmul.mubr.bf16.vlgmr.msra.gmra.mrb[4].mxu1 %v334_v52 }
 0x391   :  { %v439_v54 = vpop.f32.mrb[4].mxu1 }
 0x392   :  { %v440_v55 = vadd.f32 %v490_v53, %v439_v54  ;;  %v595_v56 = vpop.f32.mrb[5].mxu1 }
 0x393   :  { %v442_v57 = vpop.f32.mrb[6].mxu1 }
 0x394   :  { %v448_v58 = vmul.f32 1.442695, %v440_v55  ;;  %v596_v59 = vpop.f32.mrb[7].mxu1 }
 0x396   :  { %630 = vpow2.f32 %v448_v58 }
 0x3a0   :  { %v631_v62 = vpop.eup %630 }
 0x3a1   :  { %v450_v63 = vsel %vm447_vm2, %v440_v55, %v631_v62 }
 0x3a2   :  { %451 = vst [vmem:[#allocation7] sm:$0xff] %v450_v63 }
 0x3a3   :  { %687 = shalt.err (!%p684_p6)
}
 0x3a4   :  { %s688_s21 = scalar_lea.hbm %s823_s3, 128 }
 0x3a5   :  { %p689_p7 = scmp.ne.s32.totalorder %s823_s3, %s688_s21  ;;  %p692_p8 = scmp.lt.u32.totalorder %s688_s21, %s823_s3 }
 0x3a7   :  { %p694_p9 = pnand %p692_p8, %p689_p7 }
 0x3a9   :  { %697 = shalt.err (!%p694_p9)
}
 0x3aa   :  { %461 = dma.vmem_to_hbm [thread:$0]  %s459_s18, 128, %s823_s3, [#allocation4]  }
 0x3ab   :  { %702 = dma.done.wait [#allocation4], 128  }
 0x3ac   :  { %703 = vsyncadd [#allocation4], 4294967168 }
 0x3ad   :  { %465 = vsyncpa [#allocation3], 1 }
 0x3ae   :  { %466 = vsyncpa [#allocation6], 1 }
 0x3af   :  { %467 = vsyncpa [#allocation4], 1 }

</bundles_post_ra>
